<compile_context>
chip_gen: v5e
topology: v5e:2x2
jax: 0.10.0
libtpu: 0.0.40
codegen_flags: <defaults>
</compile_context>

<pallas_src>
import functools

import jax
import jax.numpy as jnp
from jax import lax
from jax.experimental import pallas as pl
from jax.experimental.pallas import tpu as pltpu


# --------------------------------------------------------------------------------------
# Hardware-aware helpers
# --------------------------------------------------------------------------------------
def _round_up(x, m):
    return ((x + m - 1) // m) * m


def _sublane_align(dtype):
    return {4: 8, 2: 16, 1: 32}.get(jnp.dtype(dtype).itemsize, 8)


def _physical_vmem_bytes():
    try:
        return int(pltpu.get_tpu_info().vmem_capacity_bytes)
    except Exception:
        pass
    try:
        kind = jax.devices()[0].device_kind.lower()
        if "7" in kind:                       # v7x: 64 MiB per TensorCore
            return 64 << 20
        return 128 << 20                      # v5e / v6e
    except Exception:
        return 64 << 20                       # conservative default


def _vmem_limit_bytes():
    # <= 48 MiB on 64-MiB parts (v7x), 64 MiB on 128-MiB parts (v5e/v6e).
    return int(min(_physical_vmem_bytes() - (16 << 20), 64 << 20))


def _has_bf16_vpu():
    # v6e/v7x have bf16 VALUs; v5e and older do not (keep the f32 upcast there).
    try:
        kind = jax.devices()[0].device_kind.lower()
    except Exception:
        return False
    if "tpu" not in kind:
        return False
    for old in ("v2", "v3", "v4", "v5"):
        if old in kind:
            return False
    return True


def _compiler_params(limit):
    return pltpu.CompilerParams(dimension_semantics=("parallel",),
                                vmem_limit_bytes=int(limit))


# --------------------------------------------------------------------------------------
# Kernel 1: loss from a precomputed similarity matrix (row-striped, per-tile partial sums).
# --------------------------------------------------------------------------------------
def cosine_loss_kernel(c_ref, o_ref, *, compute_dtype):
    """One (TM, N) full-width row strip -> (1, 8, 128) lane-dense partial loss sum."""
    i = pl.program_id(0)
    tm, n = c_ref.shape                      # full-width strip, so n == true N
    row0 = i * tm

    c = c_ref[...]
    if c.dtype != compute_dtype:             # bf16 storage on v5e -> f32; else keep dtype
        c = c.astype(compute_dtype)

    row_ids = row0 + lax.broadcasted_iota(jnp.int32, (tm, n), 0)     # global row ids
    col_ids = lax.broadcasted_iota(jnp.int32, (tm, n), 1)            # global col ids
    diag_mask = col_ids == row_ids

    # Diagonal of C restricted to this strip (exact even in bf16: one nonzero per row).
    diag = jnp.sum(jnp.where(diag_mask, c, jnp.zeros((), c.dtype)),
                   axis=1, keepdims=True).astype(jnp.float32)        # (TM, 1)

    # relu folded into the reduction: max_j relu(C + neg) == relu(max_{j!=i} C[i, j]).
    neg_inf = jnp.array(-jnp.inf, dtype=c.dtype)
    row_max = jnp.max(jnp.where(diag_mask, neg_inf, c),
                      axis=1, keepdims=True).astype(jnp.float32)     # (TM, 1)
    max_pos = jnp.maximum(row_max, 0.0)

    per_sample = jnp.maximum((1.0 - diag) + max_pos, 0.0)            # (TM, 1)
    # Mask rows past the end of the matrix (undefined data in a partial last tile).
    per_sample = jnp.where(row_ids[:, :1] < n, per_sample, 0.0)

    partial = jnp.sum(per_sample, keepdims=True)                     # (1, 1)
    o_ref[...] = jnp.broadcast_to(partial.reshape(1, 1, 1), o_ref.shape)


# --------------------------------------------------------------------------------------
# Kernel 2 (fused): loss directly from embeddings A, B — the (TM, N) strip of A @ B^T is
# produced on the MXU in-kernel; the N x N matrix never touches HBM.
# --------------------------------------------------------------------------------------
def fused_cosine_loss_kernel(a_ref, b_ref, o_ref, *, n_true):
    """A (TM, D) x B (N_pad, D)^T strip on the MXU -> (1, 8, 128) partial loss sum."""
    i = pl.program_id(0)
    tm = a_ref.shape[0]
    n_pad = b_ref.shape[0]
    row0 = i * tm

    a = a_ref[...]                                                    # (TM, D) bf16
    # (TM, D) x (N_pad, D)^T -> (TM, N_pad), f32 accumulation on the MXU.
    c = jnp.einsum("md,nd->mn", a, b_ref[...],
                   preferred_element_type=jnp.float32)

    # diag[r] = <A[r], B[r]>: rows r of B sit at the same global offset as rows r of A
    # (N is padded to a multiple of TM in the wrapper, so this slice is always in range).
    b_rows = b_ref[pl.ds(pl.multiple_of(row0, tm), tm), :]            # (TM, D)
    diag = jnp.sum(a.astype(jnp.float32) * b_rows.astype(jnp.float32),
                   axis=1, keepdims=True)                             # (TM, 1) f32

    row_ids = row0 + lax.broadcasted_iota(jnp.int32, (tm, n_pad), 0)
    col_ids = lax.broadcasted_iota(jnp.int32, (tm, n_pad), 1)
    # Zero-padded columns (>= n_true; B rows are zero) contribute 0 to the pre-relu max,
    # which relu clamps to anyway, so only the true diagonal needs masking.
    row_max = jnp.max(jnp.where(col_ids == row_ids, -jnp.inf, c),
                      axis=1, keepdims=True)                          # (TM, 1) f32
    max_pos = jnp.maximum(row_max, 0.0)

    per_sample = jnp.maximum((1.0 - diag) + max_pos, 0.0)             # (TM, 1)
    per_sample = jnp.where(row_ids[:, :1] < n_true, per_sample, 0.0)  # mask padded rows

    partial = jnp.sum(per_sample, keepdims=True)                      # (1, 1)
    o_ref[...] = jnp.broadcast_to(partial.reshape(1, 1, 1), o_ref.shape)


# --------------------------------------------------------------------------------------
# Wrappers
# --------------------------------------------------------------------------------------
def cosine_loss(cosine_similarity_matrix, *, tm=None):
    """Pallas CosineLoss from a precomputed (N, N) cosine-similarity matrix."""
    c = cosine_similarity_matrix
    n = c.shape[0]
    assert c.shape == (n, n), "expected a square similarity matrix"
    itemsize = jnp.dtype(c.dtype).itemsize
    align = _sublane_align(c.dtype)
    limit = _vmem_limit_bytes()

    if tm is None:
        # ~12 MiB double-buffered strips already sit near the HBM roofline for this
        # memory-bound path; bigger tiles are diminishing returns.
        per_buffer = min(12 << 20, (limit - (4 << 20)) // 2)
        tm = max(1, per_buffer // max(1, n * itemsize))
    tm = int(min(tm, 1024, n))
    if tm < n:
        tm = max(align, (tm // align) * align)

    if c.dtype == jnp.bfloat16 and _has_bf16_vpu():
        compute_dtype = jnp.bfloat16          # v6e/v7x: keep the strip bf16 in-register
    else:
        compute_dtype = jnp.float32           # f32 storage, or bf16 storage on v5e

    num_tiles = pl.cdiv(n, tm)
    partials = pl.pallas_call(
        functools.partial(cosine_loss_kernel, compute_dtype=compute_dtype),
        out_shape=jax.ShapeDtypeStruct((num_tiles, 8, 128), jnp.float32),
        grid_spec=pltpu.PrefetchScalarGridSpec(
            num_scalar_prefetch=0,
            grid=(num_tiles,),
            in_specs=[pl.BlockSpec((tm, n), lambda i: (i, 0))],
            out_specs=pl.BlockSpec((1, 8, 128), lambda i: (i, 0, 0)),
        ),
        compiler_params=_compiler_params(limit),
    )(c)
    return jnp.sum(partials[:, 0, 0]) / n


def fused_cosine_loss(a, b, *, tm=None):
    """Pallas CosineLoss fused with the A @ B^T similarity matmul (no NxN matrix in HBM).

    a, b: (N, D) L2-normalized embeddings; loss == CosineLoss(a @ b.T).
    Inputs are fed to the MXU as bf16 (f32 accumulation); bf16 rounding is documented.
    """
    n, d = a.shape
    assert b.shape == (n, d)
    a = a.astype(jnp.bfloat16)
    b = b.astype(jnp.bfloat16)

    limit = _vmem_limit_bytes()
    dp = _round_up(d, 128)                     # full MXU lanes
    slack = 2 << 20
    n_ub = _round_up(n, 16) + 1024             # upper bound on padded N for budgeting
    resident_b = 2 * n_ub * dp * 2             # resident B, double-buffered, bf16
    per_row = (2 * dp * 2                      # A strip, double-buffered, bf16
               + 4 * n_ub                      # f32 similarity strip row
               + 4 * dp)                       # f32 diag temporaries
    avail = limit - resident_b - slack

    if avail < 16 * per_row:
        # Resident B does not fit in VMEM: fall back to XLA matmul + the tiled loss kernel.
        # TODO(synk): column-tiled fused variant (online max over (TM, TN) strips) removes
        #             this ceiling without materializing the NxN matrix in HBM.
        sim = jnp.einsum("md,nd->mn", a, b, preferred_element_type=jnp.float32)
        return cosine_loss(sim)

    tm_cap = max(16, avail // per_row)
    if tm is None:
        tm = tm_cap
    tm = int(min(tm, tm_cap, 1024, _round_up(n, 16)))
    tm = max(16, (tm // 16) * 16)              # bf16 sublane alignment

    n_pad = _round_up(n, tm)
    num_tiles = n_pad // tm
    a_p = jnp.pad(a, ((0, n_pad - n), (0, dp - d)))
    b_p = jnp.pad(b, ((0, n_pad - n), (0, dp - d)))

    partials = pl.pallas_call(
        functools.partial(fused_cosine_loss_kernel, n_true=n),
        out_shape=jax.ShapeDtypeStruct((num_tiles, 8, 128), jnp.float32),
        grid_spec=pltpu.PrefetchScalarGridSpec(
            num_scalar_prefetch=0,
            grid=(num_tiles,),
            in_specs=[pl.BlockSpec((tm, dp), lambda i: (i, 0)),
                      pl.BlockSpec((n_pad, dp), lambda i: (0, 0))],   # B resident in VMEM
            out_specs=pl.BlockSpec((1, 8, 128), lambda i: (i, 0, 0)),
        ),
        compiler_params=_compiler_params(limit),
    )(a_p, b_p)
    return jnp.sum(partials[:, 0, 0]) / n


# --------------------------------------------------------------------------------------
# Pure-JAX reference mirroring the PyTorch forward.
# --------------------------------------------------------------------------------------
def cosine_loss_ref(c):
    c = c.astype(jnp.float32)
    n = c.shape[0]
    neg = jnp.where(jnp.eye(n, dtype=bool), -jnp.inf, 0.0)
    diag_dist = 1.0 - jnp.diag(c)
    max_pos = jnp.max(jax.nn.relu(c + neg), axis=1)
    return jnp.mean(jax.nn.relu(diag_dist + max_pos))


if __name__ == "__main__":
    key = jax.random.PRNGKey(0)
    k1, k2 = jax.random.split(key)

    N, D = 64, 32
    a = jax.random.normal(k1, (N, D), dtype=jnp.float32)
    b = jax.random.normal(k2, (N, D), dtype=jnp.float32)
    a = a / jnp.linalg.norm(a, axis=1, keepdims=True)
    b = b / jnp.linalg.norm(b, axis=1, keepdims=True)
    sim = jnp.einsum("md,nd->mn", a, b, precision=lax.Precision.HIGHEST)   # (N, N)

    # 1) Precomputed matrix, auto tile (single full-row tile at this small N).
    out1 = jax.block_until_ready(cosine_loss(sim))
    ref1 = jax.block_until_ready(cosine_loss_ref(sim))
    assert jnp.allclose(out1, ref1, atol=1e-5, rtol=1e-5), (out1, ref1)

    # 2) Row-tiled path with a partial last tile + parallel per-tile partial sums.
    sim40 = sim[:40, :40]
    out2 = jax.block_until_ready(cosine_loss(sim40, tm=16))
    ref2 = jax.block_until_ready(cosine_loss_ref(sim40))
    assert jnp.allclose(out2, ref2, atol=1e-5, rtol=1e-5), (out2, ref2)

    # 3) bf16-stored similarity matrix (bf16 in-kernel math on v6e/v7x, f32 upcast on v5e).
    sim_bf16 = sim40.astype(jnp.bfloat16)
    out3 = jax.block_until_ready(cosine_loss(sim_bf16, tm=16))
    ref3 = jax.block_until_ready(cosine_loss_ref(sim_bf16))
    assert jnp.allclose(out3, ref3, atol=1e-5, rtol=1e-5), (out3, ref3)

    # 4) Fused A @ B^T + loss (bf16 MXU tiles, D padded to 128, multiple row tiles).
    out4 = jax.block_until_ready(fused_cosine_loss(a, b, tm=16))
    a16 = a.astype(jnp.bfloat16).astype(jnp.float32)
    b16 = b.astype(jnp.bfloat16).astype(jnp.float32)
    ref4 = jax.block_until_ready(
        cosine_loss_ref(jnp.einsum("md,nd->mn", a16, b16, precision=lax.Precision.HIGHEST)))
    assert jnp.allclose(out4, ref4, atol=1e-4, rtol=1e-4), (out4, ref4)

    # 5) Fused path with row padding (N=40 is not a multiple of the row tile).
    out5 = jax.block_until_ready(fused_cosine_loss(a[:40], b[:40], tm=16))
    ref5 = jax.block_until_ready(
        cosine_loss_ref(jnp.einsum("md,nd->mn", a16[:40], b16[:40],
                                   precision=lax.Precision.HIGHEST)))
    assert jnp.allclose(out5, ref5, atol=1e-4, rtol=1e-4), (out5, ref5)

    print("KERNEL_OK")
</pallas_src>

<mosaic_0001>
module attributes {stable_mosaic.version = 11 : i64} {
  func.func @cosine_loss_kernel(%arg0: i32, %arg1: memref<64x64xf32, #tpu.memory_space<vmem>>, %arg2: memref<1x8x128xf32, #tpu.memory_space<vmem>>) attributes {dimension_semantics = [#tpu.dimension_semantics<parallel>], iteration_bounds = array<i64: 1>, scalar_prefetch = 0 : i64, scratch_operands = 0 : i64, tpu.core_type = #tpu.core_type<tc>, window_params = [{transform_indices = @transform_0, window_bounds = array<i64: 64, 64>}, {transform_indices = @transform_1, window_bounds = array<i64: 1, 8, 128>}]} {
    %c64_i32 = arith.constant 64 : i32
    %0 = arith.muli %arg0, %c64_i32 : i32
    %c0 = arith.constant 0 : index
    %c0_0 = arith.constant 0 : index
    %1 = vector.load %arg1[%c0, %c0_0] : memref<64x64xf32, #tpu.memory_space<vmem>>, vector<64x64xf32>
    %2 = tpu.iota {dimensions = array<i32: 0>} : vector<64x64xi32>
    %3 = vector.broadcast %0 : i32 to vector<64x64xi32>
    %4 = arith.addi %3, %2 : vector<64x64xi32>
    %5 = tpu.iota {dimensions = array<i32: 1>} : vector<64x64xi32>
    %6 = arith.cmpi eq, %5, %4 : vector<64x64xi32>
    %cst = arith.constant 0.000000e+00 : f32
    %7 = vector.broadcast %cst : f32 to vector<64x64xf32>
    %8 = arith.select %6, %1, %7 : vector<64x64xi1>, vector<64x64xf32>
    %cst_1 = arith.constant dense<0.000000e+00> : vector<64xf32>
    %9 = vector.multi_reduction <add>, %8, %cst_1 [1] : vector<64x64xf32> to vector<64xf32>
    %10 = vector.shape_cast %9 : vector<64xf32> to vector<64x1xf32>
    %cst_2 = arith.constant 0xFF800000 : f32
    %11 = vector.broadcast %cst_2 : f32 to vector<64x64xf32>
    %12 = arith.select %6, %11, %1 : vector<64x64xi1>, vector<64x64xf32>
    %cst_3 = arith.constant dense<0xFF800000> : vector<64xf32>
    %13 = vector.multi_reduction <maximumf>, %12, %cst_3 [1] : vector<64x64xf32> to vector<64xf32>
    %14 = vector.shape_cast %13 : vector<64xf32> to vector<64x1xf32>
    %cst_4 = arith.constant 0.000000e+00 : f32
    %15 = vector.broadcast %cst_4 : f32 to vector<64x1xf32>
    %16 = arith.maximumf %14, %15 : vector<64x1xf32>
    %cst_5 = arith.constant 1.000000e+00 : f32
    %17 = vector.broadcast %cst_5 : f32 to vector<64x1xf32>
    %18 = arith.subf %17, %10 : vector<64x1xf32>
    %19 = arith.addf %18, %16 : vector<64x1xf32>
    %cst_6 = arith.constant 0.000000e+00 : f32
    %20 = vector.broadcast %cst_6 : f32 to vector<64x1xf32>
    %21 = arith.maximumf %19, %20 : vector<64x1xf32>
    %22 = vector.extract_strided_slice %4 {offsets = [0, 0], sizes = [64, 1], strides = [1, 1]} : vector<64x64xi32> to vector<64x1xi32>
    %c64_i32_7 = arith.constant 64 : i32
    %23 = vector.broadcast %c64_i32_7 : i32 to vector<64x1xi32>
    %24 = arith.cmpi slt, %22, %23 : vector<64x1xi32>
    %cst_8 = arith.constant 0.000000e+00 : f32
    %25 = vector.broadcast %cst_8 : f32 to vector<64x1xf32>
    %26 = arith.select %24, %21, %25 : vector<64x1xi1>, vector<64x1xf32>
    %27 = vector.shape_cast %26 : vector<64x1xf32> to vector<1x64x1xf32>
    %cst_9 = arith.constant dense<0.000000e+00> : vector<1xf32>
    %28 = vector.multi_reduction <add>, %27, %cst_9 [1, 2] : vector<1x64x1xf32> to vector<1xf32>
    %29 = vector.shape_cast %28 : vector<1xf32> to vector<1x1x1xf32>
    %30 = vector.extract %29[0, 0, 0] : f32 from vector<1x1x1xf32>
    %31 = vector.broadcast %30 : f32 to vector<1x1xf32>
    %32 = vector.shape_cast %31 : vector<1x1xf32> to vector<1x1x1xf32>
    %33 = vector.shape_cast %32 : vector<1x1x1xf32> to vector<1x1x1xf32>
    %34 = vector.broadcast %33 : vector<1x1x1xf32> to vector<1x8x128xf32>
    %c0_10 = arith.constant 0 : index
    %c0_11 = arith.constant 0 : index
    %c0_12 = arith.constant 0 : index
    %35 = vector.load %arg2[%c0_10, %c0_11, %c0_12] : memref<1x8x128xf32, #tpu.memory_space<vmem>>, vector<1x8x128xf32>
    tpu.vector_store %arg2[%c0_10, %c0_11, %c0_12], %34 {strides = array<i32>} : memref<1x8x128xf32, #tpu.memory_space<vmem>>, vector<1x8x128xf32>,
    return
  }
  func.func @transform_0(%arg0: i32) -> (i32, i32) {
    %c0_i32 = arith.constant 0 : i32
    %c0_i32_0 = arith.constant 0 : i32
    return %arg0, %c0_i32 : i32, i32
  }
  func.func @transform_1(%arg0: i32) -> (i32, i32, i32) {
    %c0_i32 = arith.constant 0 : i32
    %c0_i32_0 = arith.constant 0 : i32
    %c0_i32_1 = arith.constant 0 : i32
    return %arg0, %c0_i32, %c0_i32_0 : i32, i32, i32
  }
}

</mosaic_0001>

<bundles_post_ra>
// kernel: tpu_custom_call.1
= control target key start
LH: loop header
LB: loop body
LE: loop exit
PB: predicated region body
PF: predicated region fallthrough
CT: control target
= control target key end

     0   :  { %6 = vsyncpa [#allocation3], 0  ;;  %s335_s0 = inlined_call_operand.hbm [shape: f32[64,64], index: 0, kind: input, shape index: {}]   ;;  %s336_s1 = inlined_call_operand.hbm [shape: f32[1,8,128], index: 1, kind: output, shape index: {}]  }
   0x1   :  { %7 = vsyncpa [#allocation4], 0  ;;  %s12_s8 = sshll.u32 %s335_s0, 4  ;;  %s277_s9 = smov [#allocation2]   ;;  %s13_s8 = int_to_ptr.hbm [resolvable:$true] %s12_s8 }
   0x2   :  { %s14_s10 = sshll.u32 %s277_s9, 4  ;;  %s278_s11 = smov 128   ;;  %s15_s10 = int_to_ptr.vmem [resolvable:$true] %s14_s10 }
   0x3   :  { %s279_s12 = smov 8  }
   0x4   :  { %20 = dma.hbm_to_vmem [thread:$0]  %s13_s8, 1024, %s15_s10, [#allocation3], %s278_s11, %s278_s11, %s279_s12  }
   0x5   :  { %273 = dma.done.wait [#allocation3], 1024  }
   0x6   :  { %274 = vsyncadd [#allocation3], 4294966272  ;;  %v34_v0 = vlaneseq  ;;  %vm70_vm2 = vcmask 523264   ;;  %v28_v5 = vld [vmem:[#allocation2 + $0x10] sm:$0xff]  ;;  %v26_v6 = vld [vmem:[#allocation2] sm:$0xff]  ;;  %vm175_vm9 = vcmask 7168  }
   0x7   :  { %v27_v13 = vld [vmem:[#allocation2 + $0x8] sm:$0xff]  ;;  %v29_v22 = vld [vmem:[#allocation2 + $0x18] sm:$0xff]  ;;  %v30_v23 = vld [vmem:[#allocation2 + $0x20] sm:$0xff]  ;;  %s280_s0 = smov [#allocation5]   ;;  %s209_s16 = sshll.u32 %s336_s1, 4  ;;  %s210_s16 = int_to_ptr.hbm [resolvable:$true] %s209_s16 }
   0x8   :  { %v35_v1 = vshrl.u32 %v34_v0, 7  ;;  %v294_v2 = vand.u32 127, %v34_v0  ;;  %v31_v31 = vld [vmem:[#allocation2 + $0x28] sm:$0xff]  ;;  %v32_v40 = vld [vmem:[#allocation2 + $0x30] sm:$0xff]  ;;  %v33_v41 = vld [vmem:[#allocation2 + $0x38] sm:$0xff]  ;;  %s207_s13 = sshll.u32 %s280_s0, 4  ;;  %s208_s13 = int_to_ptr.vmem [resolvable:$true] %s207_s13 }
   0xa   :  { %v37_v3 = vadd.s32 16, %v35_v1  ;;  %vm54_vm0 = vcmp.eq.s32.totalorder %v294_v2, %v35_v1  ;;  %v36_v4 = vadd.s32 8, %v35_v1  ;;  %v38_v17 = vadd.s32 24, %v35_v1 }
   0xb   :  { %v95_v8 = vsel %vm54_vm0, -inf, %v26_v6  ;;  %v62_v9 = vsel %vm54_vm0, %v26_v6, 0.0  ;;  %v39_v18 = vadd.s32 32, %v35_v1  ;;  %v40_v27 = vadd.s32 40, %v35_v1 }
   0xc   :  { %vm56_vm1 = vcmp.eq.s32.totalorder %v294_v2, %v37_v3  ;;  %v103_v11 = vsel %vm70_vm2, %v95_v8, -inf  ;;  %v71_v12 = vsel %vm70_vm2, %v62_v9, 0.0  ;;  %vm55_vm3 = vcmp.eq.s32.totalorder %v294_v2, %v36_v4 }
   0xd   :  { %v64_v7 = vsel %vm56_vm1, %v28_v5, 0.0  ;;  %104 = vmax.xlane.f32.xlu1 %v103_v11  ;;  %72 = vadd.xlane.f32.xlu0 %v71_v12  ;;  %v97_v14 = vsel %vm56_vm1, -inf, %v28_v5  ;;  %v96_v15 = vsel %vm55_vm3, -inf, %v27_v13  ;;  %v63_v16 = vsel %vm55_vm3, %v27_v13, 0.0 }
   0xe   :  { %v77_v10 = vsel %vm70_vm2, %v64_v7, 0.0  ;;  %v109_v19 = vsel %vm70_vm2, %v97_v14, -inf  ;;  %v106_v20 = vsel %vm70_vm2, %v96_v15, -inf  ;;  %v74_v21 = vsel %vm70_vm2, %v63_v16, 0.0 }
   0xf   :  { %78 = vadd.xlane.f32.xlu2 %v77_v10  ;;  %vm57_vm4 = vcmp.eq.s32.totalorder %v294_v2, %v38_v17  ;;  %vm58_vm5 = vcmp.eq.s32.totalorder %v294_v2, %v39_v18  ;;  %vm59_vm6 = vcmp.eq.s32.totalorder %v294_v2, %v40_v27  ;;  %v41_v35 = vadd.s32 48, %v35_v1 }
  0x10   :  { %v98_v24 = vsel %vm57_vm4, -inf, %v29_v22  ;;  %v66_v25 = vsel %vm58_vm5, %v30_v23, 0.0  ;;  %v65_v26 = vsel %vm57_vm4, %v29_v22, 0.0  ;;  %v67_v32 = vsel %vm59_vm6, %v31_v31, 0.0 }
  0x11   :  { %v112_v28 = vsel %vm70_vm2, %v98_v24, -inf  ;;  %v83_v29 = vsel %vm70_vm2, %v66_v25, 0.0  ;;  %v80_v30 = vsel %vm70_vm2, %v65_v26, 0.0  ;;  %v100_v33 = vsel %vm59_vm6, -inf, %v31_v31 }
  0x12   :  { %v99_v34 = vsel %vm58_vm5, -inf, %v30_v23  ;;  %v42_v36 = vadd.s32 56, %v35_v1  ;;  %v86_v37 = vsel %vm70_vm2, %v67_v32, 0.0  ;;  %v118_v38 = vsel %vm70_vm2, %v100_v33, -inf }
  0x13   :  { %v115_v39 = vsel %vm70_vm2, %v99_v34, -inf  ;;  %vm60_vm7 = vcmp.eq.s32.totalorder %v294_v2, %v41_v35 }
  0x14   :  { %vm61_vm8 = vcmp.eq.s32.totalorder %v294_v2, %v42_v36  ;;  %v101_v42 = vsel %vm60_vm7, -inf, %v32_v40  ;;  %v68_v44 = vsel %vm60_vm7, %v32_v40, 0.0 }
  0x15   :  { %107 = vmax.xlane.f32.xlu1 %v106_v20  ;;  %75 = vadd.xlane.f32.xlu0 %v74_v21  ;;  %v69_v43 = vsel %vm61_vm8, %v33_v41, 0.0  ;;  %v121_v45 = vsel %vm70_vm2, %v101_v42, -inf  ;;  %v89_v47 = vsel %vm70_vm2, %v68_v44, 0.0  ;;  %v102_v48 = vsel %vm61_vm8, -inf, %v33_v41 }
  0x16   :  { %v92_v46 = vsel %vm70_vm2, %v69_v43, 0.0  ;;  %v124_v49 = vsel %vm70_vm2, %v102_v48, -inf }
  0x17   :  { %110 = vmax.xlane.f32.xlu2 %v109_v19 }
  0x1d   :  { %113 = vmax.xlane.f32.xlu1 %v112_v28  ;;  %81 = vadd.xlane.f32.xlu0 %v80_v30 }
  0x1f   :  { %84 = vadd.xlane.f32.xlu2 %v83_v29 }
  0x25   :  { %87 = vadd.xlane.f32.xlu1 %v86_v37  ;;  %116 = vmax.xlane.f32.xlu0 %v115_v39 }
  0x27   :  { %119 = vmax.xlane.f32.xlu2 %v118_v38 }
  0x2d   :  { %122 = vmax.xlane.f32.xlu1 %v121_v45  ;;  %90 = vadd.xlane.f32.xlu0 %v89_v47 }
  0x2f   :  { %93 = vadd.xlane.f32.xlu2 %v92_v46 }
  0x35   :  { %125 = vmax.xlane.f32.xlu0 %v124_v49 }
  0x80   :  { %v105_v51 = vpop.xlane.xlu1 %104  ;;  %v73_v52 = vpop.xlane.xlu0 %72 }
  0x81   :  { %v127_v61 = vmax.f32 %v105_v51, 0.0  ;;  %v135_v62 = vsub.f32 1.0, %v73_v52 }
  0x82   :  { %v79_v50 = vpop.xlane.xlu2 %78 }
  0x83   :  { %v137_v0 = vsub.f32 1.0, %v79_v50  ;;  %v143_v1 = vadd.f32 %v135_v62, %v127_v61 }
  0x85   :  { %v151_v11 = vmax.f32 %v143_v1, 0.0 }
  0x87   :  { %v176_v18 = vsel %vm175_vm9, %v151_v11, 0.0 }
  0x88   :  { %v108_v53 = vpop.xlane.xlu1 %107  ;;  %v76_v55 = vpop.xlane.xlu0 %75 }
  0x89   :  { %v128_v59 = vmax.f32 %v108_v53, 0.0  ;;  %v136_v60 = vsub.f32 1.0, %v76_v55 }
  0x8a   :  { %v111_v54 = vpop.xlane.xlu2 %110 }
  0x8b   :  { %v144_v63 = vadd.f32 %v136_v60, %v128_v59  ;;  %v129_v2 = vmax.f32 %v111_v54, 0.0 }
  0x8d   :  { %v152_v7 = vmax.f32 %v144_v63, 0.0  ;;  %v145_v12 = vadd.f32 %v137_v0, %v129_v2 }
  0x8f   :  { %v177_v14 = vsel %vm175_vm9, %v152_v7, 0.0  ;;  %v153_v19 = vmax.f32 %v145_v12, 0.0 }
  0x90   :  { %v114_v56 = vpop.xlane.xlu1 %113  ;;  %v82_v57 = vpop.xlane.xlu0 %81  ;;  %v178_v22 = vadd.f32 %v177_v14, %v176_v18 }
  0x91   :  { %v130_v3 = vmax.f32 %v114_v56, 0.0  ;;  %v138_v4 = vsub.f32 1.0, %v82_v57  ;;  %v179_v28 = vsel %vm175_vm9, %v153_v19, 0.0 }
  0x92   :  { %v85_v58 = vpop.xlane.xlu2 %84  ;;  %v180_v31 = vadd.f32 %v179_v28, %v178_v22 }
  0x93   :  { %v139_v8 = vsub.f32 1.0, %v85_v58  ;;  %v146_v13 = vadd.f32 %v138_v4, %v130_v3 }
  0x95   :  { %v154_v20 = vmax.f32 %v146_v13, 0.0 }
  0x97   :  { %v181_v29 = vsel %vm175_vm9, %v154_v20, 0.0 }
  0x98   :  { %v88_v5 = vpop.xlane.xlu1 %87  ;;  %v117_v6 = vpop.xlane.xlu0 %116  ;;  %v182_v35 = vadd.f32 %v181_v29, %v180_v31 }
  0x99   :  { %v131_v9 = vmax.f32 %v117_v6, 0.0  ;;  %v140_v15 = vsub.f32 1.0, %v88_v5 }
  0x9a   :  { %v120_v10 = vpop.xlane.xlu2 %119 }
  0x9b   :  { %v147_v16 = vadd.f32 %v139_v8, %v131_v9  ;;  %v132_v17 = vmax.f32 %v120_v10, 0.0 }
  0x9d   :  { %v155_v25 = vmax.f32 %v147_v16, 0.0  ;;  %v148_v26 = vadd.f32 %v140_v15, %v132_v17 }
  0x9f   :  { %v183_v33 = vsel %vm175_vm9, %v155_v25, 0.0  ;;  %v156_v34 = vmax.f32 %v148_v26, 0.0 }
  0xa0   :  { %v123_v21 = vpop.xlane.xlu1 %122  ;;  %v91_v24 = vpop.xlane.xlu0 %90  ;;  %v184_v38 = vadd.f32 %v183_v33, %v182_v35 }
  0xa1   :  { %v133_v23 = vmax.f32 %v123_v21, 0.0  ;;  %v141_v27 = vsub.f32 1.0, %v91_v24  ;;  %v185_v40 = vsel %vm175_vm9, %v156_v34, 0.0 }
  0xa2   :  { %v94_v32 = vpop.xlane.xlu2 %93  ;;  %v186_v44 = vadd.f32 %v185_v40, %v184_v38 }
  0xa3   :  { %v149_v30 = vadd.f32 %v141_v27, %v133_v23  ;;  %v142_v37 = vsub.f32 1.0, %v94_v32 }
  0xa5   :  { %v157_v36 = vmax.f32 %v149_v30, 0.0 }
  0xa7   :  { %v187_v43 = vsel %vm175_vm9, %v157_v36, 0.0 }
  0xa8   :  { %v126_v39 = vpop.xlane.xlu0 %125  ;;  %v188_v46 = vadd.f32 %v187_v43, %v186_v44 }
  0xa9   :  { %v134_v41 = vmax.f32 %v126_v39, 0.0 }
  0xab   :  { %v150_v42 = vadd.f32 %v142_v37, %v134_v41 }
  0xad   :  { %v158_v45 = vmax.f32 %v150_v42, 0.0 }
  0xaf   :  { %v189_v47 = vsel %vm175_vm9, %v158_v45, 0.0 }
  0xb0   :  { %v190_v48 = vadd.f32 %v189_v47, %v188_v46 }
  0xb2   :  { %191 = vadd.xlane.f32.xlu1 %v190_v48 }
 0x125   :  { %v192_v49 = vpop.xlane.xlu1 %191 }
 0x126   :  { %v193_v50 = vrot.slane %v192_v49, 4 }
 0x128   :  { %v194_v51 = vadd.f32 %v193_v50, %v192_v49 }
 0x12a   :  { %v195_v52 = vrot.slane %v194_v51, 2 }
 0x12c   :  { %v196_v53 = vadd.f32 %v195_v52, %v194_v51 }
 0x12e   :  { %v197_v54 = vrot.slane %v196_v53, 1 }
 0x130   :  { %v198_v55 = vadd.f32 %v197_v54, %v196_v53 }
 0x132   :  { %219 = vpush %v198_v55 }
 0x163   :  { %s220_s17 = spop %219 }
 0x164   :  { %v200_v56 = vstv %s220_s17 }
 0x165   :  { %201 = vst [vmem:[#allocation5] sm:$0xff] %v200_v56 }
 0x166   :  { %212 = dma.vmem_to_hbm [thread:$0]  %s208_s13, 128, %s210_s16, [#allocation4]  }
 0x167   :  { %275 = dma.done.wait [#allocation4], 128  }
 0x168   :  { %276 = vsyncadd [#allocation4], 4294967168 }
 0x169   :  { %217 = vsyncpa [#allocation3], 1 }
 0x16a   :  { %218 = vsyncpa [#allocation4], 1 }

</bundles_post_ra>
